<compile_context>
chip_gen: v6e
topology: v6e:2x2x1
jax: 0.10.0
libtpu: 0.0.40
codegen_flags: <defaults>
</compile_context>

<pallas_src>
import jax
import jax.numpy as jnp
from jax.experimental import pallas as pl
from jax.experimental.pallas import tpu as pltpu

HIDDEN = 768      # HuBERT hidden size expected by the classifier
TM_MAX = 1024     # row tile cap (amortizes ~0.35 us/grid-step overhead)
LANE = 128        # lane width; classifier N padded to this


def _round_up(x, m):
    return (x + m - 1) // m * m


def _fused_kernel(x_ref, w_ref, b_ref, o_ref):
    # Single composed matmul: (tm, D_in) @ (D_in, n_pad) + b_comb.
    # x tile is cast to bf16 on the VPU here (hidden under the matmul);
    # weights were pre-composed and pre-cast offline; f32 accumulation.
    y = jnp.dot(x_ref[...].astype(jnp.bfloat16), w_ref[...],
                preferred_element_type=jnp.float32) + b_ref[...]
    o_ref[...] = y


def prepare_composed_params(w_feat, b_feat, w_cls, b_cls):
    """One-time (per-parameter-set) prep, hoisted out of the forward path.

    w_feat: (D_in, 768) surrogate backbone, b_feat: (768,)
    w_cls:  (n_classes, 768) classifier weight, b_cls: (n_classes,)
    Returns w_comb (D_in, n_pad) bf16, b_comb (1, n_pad) f32.
    """
    n_classes = w_cls.shape[0]
    n_pad = _round_up(max(n_classes, LANE), LANE)

    # Lane-pad the transposed classifier weight with zeros (padded logits = 0,
    # sliced off later; never reduced over inside the kernel).
    w_cls_t = jnp.zeros((HIDDEN, n_pad), jnp.float32)
    w_cls_t = w_cls_t.at[:, :n_classes].set(w_cls.T.astype(jnp.float32))

    # Exact composition of the two linear stages (done in f32).
    w_comb = (w_feat.astype(jnp.float32) @ w_cls_t).astype(jnp.bfloat16)   # (D_in, n_pad)
    b_comb = (b_feat.astype(jnp.float32) @ w_cls_t)[None, :]               # (1, n_pad)
    b_comb = b_comb.at[:, :n_classes].add(b_cls.astype(jnp.float32))
    return w_comb, b_comb


def transferred_model_forward(x, w_comb, b_comb, n_classes):
    """x: (B, T, D_in) f32; w_comb: (D_in, n_pad) bf16; b_comb: (1, n_pad) f32."""
    B, T, D_in = x.shape
    M = B * T
    n_pad = w_comb.shape[1]

    # Row tile: cap at TM_MAX, 8-row aligned (f32 x tile / f32 out tile).
    tm = min(TM_MAX, _round_up(M, 8))
    # Keep >= 2 grid steps when the row count allows it so both v7x
    # TensorCores get work (harmless on single-TC v5e/v6e).
    if tm >= M and M > 8:
        tm = _round_up((M + 1) // 2, 8)
    m_pad = _round_up(M, tm)

    x2d = x.reshape(M, D_in)          # stays f32; cast to bf16 per-tile in-kernel
    if m_pad != M:
        x2d = jnp.pad(x2d, ((0, m_pad - M), (0, 0)))

    grid = (m_pad // tm,)
    flops = 2 * m_pad * D_in * n_pad
    bytes_accessed = (x2d.size * 4 + w_comb.size * 2 + b_comb.size * 4
                      + m_pad * n_pad * 4)

    out2d = pl.pallas_call(
        _fused_kernel,
        out_shape=jax.ShapeDtypeStruct((m_pad, n_pad), jnp.float32),
        grid=grid,
        in_specs=[
            pl.BlockSpec((tm, D_in), lambda i: (i, 0)),      # x row tile (streamed)
            pl.BlockSpec((D_in, n_pad), lambda i: (0, 0)),   # composed weight (resident)
            pl.BlockSpec((1, n_pad), lambda i: (0, 0)),      # composed bias (resident)
        ],
        out_specs=pl.BlockSpec((tm, n_pad), lambda i: (i, 0)),
        compiler_params=pltpu.CompilerParams(
            dimension_semantics=("parallel",),
            # live set at tm=1024: 2x x tile + 2x out tile + tiny weights, a few
            # MiB -> 32 MiB gives ample headroom on v5e/v6e/v7x alike.
            vmem_limit_bytes=32 * 1024 * 1024),
        cost_estimate=pl.CostEstimate(
            flops=flops, transcendentals=0, bytes_accessed=bytes_accessed),
    )(x2d, w_comb, b_comb)

    return out2d[:M, :n_classes].reshape(B, T, n_classes)


if __name__ == "__main__":
    # Small deterministic setup consistent with the module:
    #   batch=2, seq(T)=8, surrogate input feature dim=32, n_classes=10
    B, T, D_in, n_classes = 2, 8, 32, 10

    key = jax.random.PRNGKey(0)
    kx, kwf, kbf, kwc, kbc = jax.random.split(key, 5)

    x = jax.random.normal(kx, (B, T, D_in), dtype=jnp.float32)

    # surrogate backbone params (deterministic init)
    w_feat = jax.random.normal(kwf, (D_in, HIDDEN), dtype=jnp.float32) * 0.02
    b_feat = jax.random.normal(kbf, (HIDDEN,), dtype=jnp.float32) * 0.02

    # classifier params: nn.Linear(768, n_classes) -> weight (n_classes, 768)
    w_cls = jax.random.normal(kwc, (n_classes, HIDDEN), dtype=jnp.float32) * 0.02
    b_cls = jax.random.normal(kbc, (n_classes,), dtype=jnp.float32) * 0.02

    # One-time weight prep (hoisted out of the per-call path).
    w_comb, b_comb = prepare_composed_params(w_feat, b_feat, w_cls, b_cls)
    w_comb, b_comb = jax.block_until_ready((w_comb, b_comb))

    out = transferred_model_forward(x, w_comb, b_comb, n_classes)
    out = jax.block_until_ready(out)

    # reference check (pure f32 JAX, two-stage); tolerance covers bf16 operands
    h_ref = x.reshape(B * T, D_in) @ w_feat + b_feat
    y_ref = (h_ref @ w_cls.T + b_cls).reshape(B, T, n_classes)
    assert out.shape == (B, T, n_classes)
    assert jnp.allclose(out, y_ref, atol=2e-2, rtol=2e-2)

    print("KERNEL_OK")
</pallas_src>

<mosaic_0001>
module attributes {stable_mosaic.version = 11 : i64} {
  func.func @_fused_kernel(%arg0: i32, %arg1: memref<8x32xf32, #tpu.memory_space<vmem>>, %arg2: memref<32x128xbf16, #tpu.memory_space<vmem>>, %arg3: memref<1x128xf32, #tpu.memory_space<vmem>>, %arg4: memref<8x128xf32, #tpu.memory_space<vmem>>) attributes {dimension_semantics = [#tpu.dimension_semantics<parallel>], iteration_bounds = array<i64: 2>, scalar_prefetch = 0 : i64, scratch_operands = 0 : i64, tpu.core_type = #tpu.core_type<tc>, window_params = [{transform_indices = @transform_0, window_bounds = array<i64: 8, 32>}, {pipeline_mode = #tpu.pipeline_mode<synchronous>, transform_indices = @transform_1, window_bounds = array<i64: 32, 128>}, {pipeline_mode = #tpu.pipeline_mode<synchronous>, transform_indices = @transform_2, window_bounds = array<i64: 1, 128>}, {transform_indices = @transform_3, window_bounds = array<i64: 8, 128>}]} {
    %c0 = arith.constant 0 : index
    %c0_0 = arith.constant 0 : index
    %0 = vector.load %arg1[%c0, %c0_0] : memref<8x32xf32, #tpu.memory_space<vmem>>, vector<8x32xf32>
    %1 = arith.truncf %0 : vector<8x32xf32> to vector<8x32xbf16>
    %c0_1 = arith.constant 0 : index
    %c0_2 = arith.constant 0 : index
    %2 = vector.load %arg2[%c0_1, %c0_2] : memref<32x128xbf16, #tpu.memory_space<vmem>>, vector<32x128xbf16>
    %cst = arith.constant dense<0.000000e+00> : vector<8x128xf32>
    %3 = tpu.matmul %1, %2, %cst {dimension_numbers = #tpu.dot_dimension_numbers<[1], [0], [0], [1], [0, 0, 1, 1], [], []>} : vector<8x32xbf16>, vector<32x128xbf16>, vector<8x128xf32> -> vector<8x128xf32>
    %c0_3 = arith.constant 0 : index
    %c0_4 = arith.constant 0 : index
    %4 = vector.load %arg3[%c0_3, %c0_4] : memref<1x128xf32, #tpu.memory_space<vmem>>, vector<1x128xf32>
    %5 = vector.broadcast %4 : vector<1x128xf32> to vector<8x128xf32>
    %6 = arith.addf %3, %5 : vector<8x128xf32>
    %c0_5 = arith.constant 0 : index
    %c0_6 = arith.constant 0 : index
    %7 = vector.load %arg4[%c0_5, %c0_6] : memref<8x128xf32, #tpu.memory_space<vmem>>, vector<8x128xf32>
    tpu.vector_store %arg4[%c0_5, %c0_6], %6 {strides = array<i32>} : memref<8x128xf32, #tpu.memory_space<vmem>>, vector<8x128xf32>,
    return
  }
  func.func @transform_0(%arg0: i32) -> (i32, i32) {
    %c0_i32 = arith.constant 0 : i32
    %c0_i32_0 = arith.constant 0 : i32
    return %arg0, %c0_i32 : i32, i32
  }
  func.func @transform_1(%arg0: i32) -> (i32, i32) {
    %c0_i32 = arith.constant 0 : i32
    %c0_i32_0 = arith.constant 0 : i32
    %c0_i32_1 = arith.constant 0 : i32
    return %c0_i32, %c0_i32_0 : i32, i32
  }
  func.func @transform_2(%arg0: i32) -> (i32, i32) {
    %c0_i32 = arith.constant 0 : i32
    %c0_i32_0 = arith.constant 0 : i32
    %c0_i32_1 = arith.constant 0 : i32
    return %c0_i32, %c0_i32_0 : i32, i32
  }
  func.func @transform_3(%arg0: i32) -> (i32, i32) {
    %c0_i32 = arith.constant 0 : i32
    %c0_i32_0 = arith.constant 0 : i32
    return %arg0, %c0_i32 : i32, i32
  }
}

</mosaic_0001>

<bundles_post_ra>
// kernel: tpu_custom_call.1
= control target key start
LH: loop header
LB: loop body
LE: loop exit
PB: predicated region body
PF: predicated region fallthrough
CT: control target
= control target key end

     0   :  { %8 = vsyncpa [#allocation3], 0  ;;  %s778_s0 = inlined_call_operand.hbm [shape: f32[16,32], index: 0, kind: input, shape index: {}]   ;;  %s779_s1 = inlined_call_operand.hbm [shape: bf16[32,128], index: 1, kind: input, shape index: {}]   ;;  %s780_s2 = inlined_call_operand.vmem [shape: f32[1,128], index: 2, kind: input, shape index: {}]   ;;  %s781_s3 = inlined_call_operand.hbm [shape: f32[16,128], index: 3, kind: output, shape index: {}]  }
   0x1   :  { %10 = vsyncpa [#allocation3 + $0x1], 0 }
   0x2   :  { %11 = vsyncpa [#allocation6], 0 }
   0x3   :  { %12 = vsyncpa [#allocation4], 0 }
   0x4   :  { %14 = vsyncpa [#allocation4 + $0x1], 0  ;;  %s609_s12 = smov 0   ;;  %s611_s13 = smov 0  }
   0x5   :  { %s613_s14 = smov 0   ;;  %s615_s15 = smov 0  }
   0x6 LB: > { %s630_s16 = sadd.s32 4294967295, %s580_s15   ;;  %s366_s17 = sadd.s32 4294967294, %s580_s15   ;;  %s580_s15 = sphi %s615_s15, %s803_s15   ;;  %s576_s14 = sphi %s613_s14, %s802_s14   ;;  %s572_s13 = sphi %s611_s13, %s801_s13   ;;  %s568_s12 = sphi %s609_s12, %s800_s12  }
   0x7   : > { %p40_p0 = scmp.ne.s32.totalorder %s572_s13, %s568_s12  ;;  %p782_p1 = scmp.eq.s32.totalorder %s630_s16, 0 }
   0x8   : > { %p112_p3 = scmp.eq.s32.totalorder %s366_s17, 1  ;;  %p367_p5 = scmp.ge.s32.totalorder %s580_s15, 1 }
   0x9   : > { %p639_p4 = por %p782_p1, %p40_p0  ;;  %p119_p7 = scmp.lt.s32.totalorder %s580_s15, 3 }
   0xa   : > { %p644_p6 = por %p112_p3, %p40_p0  ;;  %s582_s21 = smov [#allocation5]  }
   0xb   : > { %s786_s18 = scalar_select %p639_p4, 1, 0 }
   0xc   : > { %s787_s19 = scalar_select %p644_p6, 1, 0 }
   0xd   : > { %p649_p8 = pnand %p367_p5, %p119_p7  ;;  %s131_s22 = sshll.u32 %s582_s21, 4  ;;  %s132_s22 = int_to_ptr.vmem [resolvable:$true] %s131_s22 }
   0xe   : > { %s663_s24 = sadd.s32 1, %s580_s15   ;;  %s27_s25 = sadd.s32 1, %s576_s14 }
   0xf   : > { %s788_s20 = scalar_select %p649_p8, 1, 0 }
  0x10   : > { %p403_p9 = pneg %p649_p8  ;;  %s24_s26 = ssub.s32 %s580_s15, %s663_s24 }
  0x11   : > { %s469_s27 = scalar_lea.vmem %s132_s22, 256  ;;  %p477_p5 = scmp.lt.s32.totalorder %s132_s22, %s132_s22 }
  0x12   : > { %p658_p11 = pnand %p403_p9, %p782_p1  ;;  %p470_p13 = scmp.ne.s32.totalorder %s132_s22, %s469_s27 }
  0x13   : > { %p478_p7 = scmp.lt.s32.totalorder %s469_s27, %s469_s27 }
  0x14   : > { %p460_p12 = pneg %p658_p11 }
  0x15   : > { %p479_p10 = por %p478_p7, %p477_p5 }
  0x16   : > { %p472_p0 = pnand %p470_p13, %p460_p12 }
  0x18   : > { %p473_p3 = pneg %p472_p0 }
  0x1a   : > { %p480_p2 = pnand %p479_p10, %p473_p3 }
  0x1c   : > { %483 = shalt.err (!%p480_p2)
}
  0x1d   : > { %s583_s28 = smov 64   ;;  %s584_s29 = smov 4  }
  0x1e   : > { %406 = dma.hbm_to_vmem [thread:$0]  (!%p658_p11), %s779_s1, 256, %s132_s22, [#allocation6], %s583_s28, %s583_s28, %s584_s29  }
  0x1f   : > { %p25_p9 = scmp.eq.s32.totalorder %s24_s26, 0  ;;  %p34_p12 = scmp.ne.s32.totalorder %s576_s14, %s572_s13 }
  0x20   : > { %p35_p10 = scmp.eq.s32.totalorder %s580_s15, 0  ;;  %p416_p2 = scmp.lt.s32.totalorder %s580_s15, 2 }
  0x21   : > { %s680_s5 = scalar_select %p25_p9, %s576_s14, %s27_s25  }
  0x22   : > { %p36_p13 = por %p35_p10, %p34_p12  ;;  %p790_p0 = scmp.eq.s32.totalorder %s630_s16, 1 }
  0x23   : > { %s148_s7 = sand.u32 1, %s576_s14   ;;  %s371_s8 = sshll.u32 %s580_s15, 7 }
  0x24   : > { %p684_p3 = por %p790_p0, %p34_p12  ;;  %s370_s9 = sshll.u32 %s148_s7, 3 }
  0x25   : > { %s693_s17 = scalar_lea.hbm %s778_s0, %s371_s8  ;;  %s152_s21 = scalar_lea.vmem [#allocation2], %s370_s9 }
  0x26   : > { %s791_s6 = scalar_select %p684_p3, 1, 0 }
  0x27   : > { %s159_s22 = sshll.u32 %s152_s21, 4  ;;  %p695_p11 = pnand %p416_p2, %p36_p13  ;;  %s160_s22 = int_to_ptr.vmem [resolvable:$true] %s159_s22 }
  0x28   : > { %s149_s25 = scalar_lea.sflag [#allocation3], %s148_s7  ;;  %s484_s26 = scalar_lea.hbm %s693_s17, 128 }
  0x29   : > { %p485_p5 = scmp.ne.s32.totalorder %s693_s17, %s484_s26  ;;  %p486_p7 = pneg %p695_p11 }
  0x2a   : > { %s489_s29 = scalar_lea.hbm %s778_s0, 256  ;;  %p490_p10 = scmp.lt.s32.totalorder %s693_s17, %s778_s0 }
  0x2b   : > { %p487_p9 = pnand %p486_p7, %p485_p5  ;;  %p491_p2 = scmp.lt.s32.totalorder %s489_s29, %s484_s26 }
  0x2d   : > { %p488_p12 = pneg %p487_p9  ;;  %p492_p13 = por %p491_p2, %p490_p10 }
  0x2f   : > { %p493_p0 = pnand %p492_p13, %p488_p12 }
  0x31   : > { %496 = shalt.err (!%p493_p0)
}
  0x32   : > { %s497_s8 = scalar_lea.vmem %s160_s22, 128  ;;  %s585_s7 = smov [#allocation2]  }
  0x33   : > { %p498_p1 = scmp.ne.s32.totalorder %s160_s22, %s497_s8  ;;  %s502_s9 = sshll.u32 %s585_s7, 4  ;;  %s503_s9 = int_to_ptr.vmem [resolvable:$false] %s502_s9 }
  0x34   : > { %s504_s10 = scalar_lea.vmem %s503_s9, 256  ;;  %p505_p5 = scmp.lt.s32.totalorder %s160_s22, %s503_s9 }
  0x35   : > { %p500_p6 = pnand %p498_p1, %p486_p7  ;;  %p506_p9 = scmp.lt.s32.totalorder %s504_s10, %s497_s8 }
  0x37   : > { %p501_p3 = pneg %p500_p6  ;;  %p507_p4 = por %p506_p9, %p505_p5 }
  0x39   : > { %p508_p8 = pnand %p507_p4, %p501_p3 }
  0x3b   : > { %511 = shalt.err (!%p508_p8)
}
  0x3c   : > { %410 = dma.hbm_to_vmem [thread:$0]  (!%p695_p11), %s693_s17, 128, %s160_s22, %s149_s25  }
  0x3d   : > { %p793_p12 = scmp.ne.s32.totalorder %s788_s20, 0 }
  0x3e   : > { %s716_s11 = sand.u32 (!%p793_p12), 1, %s572_s13   ;;  %p794_p1 = scmp.ne.s32.totalorder (!%p793_p12), %s786_s18, 0 }
  0x3f   : > { %168 = sbr.rel (%p793_p12) target bundleno = 290 (0x122), region = 32  ;;  %s373_s21 = sshll.u32 (!%p793_p12), %s716_s11, 3 }
  0x40   : > { %s171_s26 = scalar_lea.sflag (!%p793_p12), [#allocation3], %s716_s11  ;;  %s174_s27 = scalar_lea.vmem (!%p793_p12), [#allocation2], %s373_s21 }
  0x44   : > { %555 = dma.done.wait (%p794_p1), %s171_s26, 128  }
  0x45   : > { %557 = vsyncadd (%p794_p1), %s171_s26, 4294967168  ;;  %p795_p4 = scmp.eq.s32.totalorder %s630_s16, 0 }
  0x47   : > { %559 = dma.done.wait (%p795_p4), [#allocation6], 256   ;;  %p796_p6 = pmov %p795_p4 }
  0x48   : > { %v586_v0 = vmov 0.0   ;;  %vm587_vm0 = vmmov 0   ;;  %v456_v1 = vld [vmem:[#allocation5 + $0x8] sm:$0xff]   ;;  %v457_v2 = vld [vmem:[#allocation5] sm:$0xff]   ;;  %v202_v3 = vld [vmem:[%s174_s27] sm:$0xff]  ;;  %vm227_vm1 = vcmask 261120  }
  0x49   : > { %561 = vsyncadd (%p796_p6), [#allocation6], 4294967040  ;;  %387 = vmatprep.subr.bf16.mxu0 %v586_v0  ;;  %391 = vmatprep.mubr.msk.bf16.mxu0 %vm587_vm0, %v586_v0  ;;  %v203_v4 = vpack.c.bf16 %v202_v3, %v202_v3  ;;  %v376_v5 = vld [vmem:[%s780_s2] ss:$0 sm:$0xff]  ;;  %s381_s17 = sshll.u32 %s630_s16, 7  ;;  %s200_s22 = scalar_lea.vmem [#allocation7], %s373_s21 }
  0x4a   : > { %388 = vmatpush3.bf16.msra.mxu0 %v456_v1  ;;  %s286_s23 = sshll.u32 %s200_s22, 4  ;;  %s735_s29 = scalar_lea.hbm %s781_s3, %s381_s17  ;;  %s737_s23 = int_to_ptr.vmem [resolvable:$true] %s286_s23 }
  0x4b   : > { %389 = vmatprep.subr.bf16.mxu0 %v586_v0  ;;  %s273_s30 = scalar_lea.sflag [#allocation4], %s716_s11  ;;  %s512_s4 = scalar_lea.vmem %s737_s23, 128 }
  0x4c   : > { %p513_p8 = scmp.ne.s32.totalorder %s737_s23, %s512_s4  ;;  %p797_p3 = scmp.ne.s32.totalorder %s791_s6, 0 }
  0x4d   : > { %s588_s16 = smov [#allocation7]  }
  0x4e   : > { %390 = vmatpush3.bf16.msra.mxu0 %v457_v2  ;;  %p514_p11 = pnand %p513_p8, %p797_p3  ;;  %s516_s8 = sshll.u32 %s588_s16, 4  ;;  %s517_s8 = int_to_ptr.vmem [resolvable:$false] %s516_s8 }
  0x4f   : > { %s518_s7 = scalar_lea.vmem %s517_s8, 256  ;;  %p519_p10 = scmp.lt.s32.totalorder %s737_s23, %s517_s8 }
  0x50   : > { %p515_p7 = pneg %p514_p11  ;;  %p520_p2 = scmp.lt.s32.totalorder %s518_s7, %s512_s4 }
  0x51   : > { %392 = vmatmul.mubr.msk.bf16.vlgmr.msra.gmra.mxu0 %vm227_vm1, %v203_v4 }
  0x52   : > { %p521_p13 = por %p520_p2, %p519_p10 }
  0x54   : > { %p522_p0 = pnand %p521_p13, %p515_p7 }
 0x111   : > { %v265_v6 = vpop.f32.mrf.mxu0 }
 0x112   : > { %v266_v7 = vadd.f32 %v376_v5, %v265_v6 }
 0x113   : > { %v393_v8 = vpop.f32.mrf.mxu0 }
 0x114   : > { %271 = vst [vmem:[%s200_s22] sm:$0xff] %v266_v7 }
 0x115   : > { %v268_v9 = vpop.f32.mrf.mxu0 }
 0x116   : > { %525 = shalt.err (!%p522_p0)
}
 0x117   : > { %s526_s9 = scalar_lea.hbm %s735_s29, 128  ;;  %s530_s21 = scalar_lea.hbm %s781_s3, 256 }
 0x118   : > { %p527_p5 = scmp.ne.s32.totalorder %s735_s29, %s526_s9  ;;  %p531_p1 = scmp.lt.s32.totalorder %s735_s29, %s781_s3 }
 0x119   : > { %p532_p4 = scmp.lt.s32.totalorder %s530_s21, %s526_s9 }
 0x11a   : > { %p528_p9 = pnand %p527_p5, %p797_p3 }
 0x11b   : > { %p533_p6 = por %p532_p4, %p531_p1 }
 0x11c   : > { %p529_p12 = pneg %p528_p9 }
 0x11e   : > { %p534_p8 = pnand %p533_p6, %p529_p12 }
 0x120   : > { %537 = shalt.err (!%p534_p8)
}
 0x121   : > { %401 = dma.vmem_to_hbm [thread:$0]  (%p797_p3), %s737_s23, 128, %s735_s29, %s273_s30   ;;  %v394_v10 = vpop.f32.mrf.mxu0 }
 0x122 PF: > { %s298_s18 = sand.u32 1, %s568_s12   ;;  %p798_p11 = scmp.ne.s32.totalorder %s787_s19, 0 }
 0x123   : > { %p799_p7 = scmp.ge.s32.totalorder %s580_s15, 2  ;;  %s299_s20 = scalar_lea.sflag [#allocation4], %s298_s18 }
 0x125   : > { %p412_p10 = pnand %p799_p7, %p798_p11 }
 0x127   : > { %p413_p2 = pneg %p412_p10 }
 0x129   : > { %563 = dma.done.wait (%p413_p2), %s299_s20, 128  }
 0x12a   : > { %565 = vsyncadd (%p413_p2), %s299_s20, 4294967168  ;;  %p17_p13 = scmp.ge.s32.totalorder %s663_s24, 4   ;;  %s800_s12 = smov %s572_s13 }
 0x12b   : > { %s801_s13 = smov %s576_s14  ;;  %s802_s14 = smov %s680_s5 }
 0x12c   : > { %s803_s15 = smov %s663_s24  ;;  %19 = sbr.rel (!%p17_p13) target bundleno = 6 (0x6), region = 81 }
 0x131   :  { %304 = vsyncpa [#allocation3], 1 }
 0x132   :  { %306 = vsyncpa [#allocation3 + $0x1], 1 }
 0x133   :  { %307 = vsyncpa [#allocation6], 1 }
 0x134   :  { %308 = vsyncpa [#allocation4], 1 }
 0x135   :  { %310 = vsyncpa [#allocation4 + $0x1], 1 }

</bundles_post_ra>
